<compile_context>
chip_gen: v6e
topology: v6e:2x2x1
jax: 0.10.0
libtpu: 0.0.40
codegen_flags: <defaults>
</compile_context>

<pallas_src>
import functools
import math

import numpy as np
import jax
import jax.numpy as jnp
from jax.experimental import pallas as pl
from jax.experimental.pallas import tpu as pltpu

LANE = 128


def _round_up(x, m):
    return ((x + m - 1) // m) * m


def _pad2(a, rows, cols):
    return jnp.pad(a, ((0, rows - a.shape[0]), (0, cols - a.shape[1])))


# ---------------------------------------------------------------------------
# Kernel 1: f_edge, computed ONCE per (layer, edge_tile)  (hoisted out of the
# node-tile loop per the performance review).
# ---------------------------------------------------------------------------
def _f_edge_kernel(ew_ref, w1_ref, b1_ref, w2_ref, b2_ref, ef_ref, *, compute_dtype):
    # Linear(1, edge_dim) with in_features=1 is an outer-product broadcast
    # (avoids a degenerate K=1 matmul); Dropout is identity in eval mode.
    h = jnp.maximum(ew_ref[0] * w1_ref[0] + b1_ref[0], 0.0)                   # (te, Fe) f32
    ef = jnp.dot(h.astype(compute_dtype), w2_ref[0],
                 preferred_element_type=jnp.float32) + b2_ref[0]              # (te, Fn) f32
    ef_ref[0] = ef.astype(ef_ref.dtype)


# ---------------------------------------------------------------------------
# Kernel 2: tiled scatter_add (one-hot MXU contraction) + f_node.
# Grid = (layer, node_tile, edge_tile); edge_tile is the reduction axis.
# ---------------------------------------------------------------------------
def _scatter_fnode_kernel(dst_ref, ef_ref, w3_ref, b3_ref, w4_ref, b4_ref,
                          out_ref, acc_ref, *, compute_dtype):
    j = pl.program_id(2)
    tn = acc_ref.shape[0]
    te = dst_ref.shape[2]

    @pl.when(j == 0)
    def _init():
        acc_ref[...] = jnp.zeros_like(acc_ref)

    # scatter_add(edge_feat, dst) restricted to this node tile:
    # per-tile one-hot (tn, te) @ edge_feat (te, Fn) on the MXU, f32 accumulation in VMEM.
    node_ids = pl.program_id(1) * tn + jax.lax.broadcasted_iota(jnp.int32, (tn, te), 0)
    onehot = (node_ids == dst_ref[0]).astype(compute_dtype)                   # 0/1: exact in bf16
    acc_ref[...] += jnp.dot(onehot, ef_ref[0], preferred_element_type=jnp.float32)

    # f_node: Linear -> ReLU -> Linear, once per (layer, node_tile) on the last edge step.
    @pl.when(j == pl.num_programs(2) - 1)
    def _finalize():
        nf = acc_ref[...].astype(compute_dtype)
        g = jnp.maximum(jnp.dot(nf, w3_ref[0],
                                preferred_element_type=jnp.float32) + b3_ref[0], 0.0)
        out_ref[0] = (jnp.dot(g.astype(compute_dtype), w4_ref[0],
                              preferred_element_type=jnp.float32) + b4_ref[0]
                      ).astype(out_ref.dtype)


def mlstruct_forward(params, graphs, edge_w=False, *, tn=256, te=2048,
                     compute_dtype=jnp.bfloat16):
    """graphs: list of (edge_index [2,E] int, edge_weight [E] f32, num_nodes int)."""
    results = [None] * len(graphs)
    active = [l for l, g in enumerate(graphs) if g[0].shape[1] > 0]
    if not active:
        return results

    edge_dim = params[active[0]]["w1"].shape[1]
    node_dim = params[active[0]]["w4"].shape[1]
    Fe = _round_up(edge_dim, LANE)     # pad feature dims to 128 lanes (dense MXU / stores)
    Fn = _round_up(node_dim, LANE)

    E_max = max(graphs[l][0].shape[1] for l in active)
    N_max = max(int(graphs[l][2]) for l in active)
    te = min(te, _round_up(E_max, LANE))     # clamp tiles for small graphs
    tn = min(tn, _round_up(N_max, LANE))
    E_pad = _round_up(E_max, te)
    N_pad = _round_up(N_max, tn)
    L = len(active)
    cdt = compute_dtype

    # Pack edge data.  Padded edges get dst == N_pad: no node-tile iota ever matches it,
    # so they are silently dropped by the one-hot (documented padding convention).
    # dst is lane-dense [L, 1, E_pad]; ew is [L, E_pad, 1] but only touched by the
    # (cheap, once-per-edge-tile) f_edge precompute kernel, never in the hot loop.
    dst_np = np.full((L, 1, E_pad), N_pad, dtype=np.int32)
    ew_np = np.zeros((L, E_pad, 1), dtype=np.float32)
    for a, l in enumerate(active):
        edge_index, edge_weight, num_nodes = graphs[l]
        E = edge_index.shape[1]
        dst = np.asarray(edge_index[1], dtype=np.int32)
        if dst.size and (dst.min() < 0 or dst.max() >= int(num_nodes)):
            raise ValueError(f"graph {l}: destination indices out of range [0, {num_nodes})")
        dst_np[a, 0, :E] = dst
        ew_np[a, :E, 0] = np.asarray(edge_weight, np.float32) if edge_w else 1.0
    dst_all = jnp.asarray(dst_np)
    ew_all = jnp.asarray(ew_np)

    # Stack per-layer weights, zero-padded to 128-lane feature dims.  Padded feature
    # columns stay exactly zero through every layer, so outputs are simply sliced.
    # Matmul weights are pre-cast to compute_dtype (bf16 fast path); biases stay f32
    # since they are added to f32 MXU accumulations.
    w1 = jnp.stack([_pad2(params[l]["w1"], 1, Fe) for l in active])
    b1 = jnp.stack([_pad2(params[l]["b1"], 1, Fe) for l in active])
    w2 = jnp.stack([_pad2(params[l]["w2"], Fe, Fn) for l in active]).astype(cdt)
    b2 = jnp.stack([_pad2(params[l]["b2"], 1, Fn) for l in active])
    w3 = jnp.stack([_pad2(params[l]["w3"], Fn, Fn) for l in active]).astype(cdt)
    b3 = jnp.stack([_pad2(params[l]["b3"], 1, Fn) for l in active])
    w4 = jnp.stack([_pad2(params[l]["w4"], Fn, Fn) for l in active]).astype(cdt)
    b4 = jnp.stack([_pad2(params[l]["b4"], 1, Fn) for l in active])

    # ---- Pass 1: f_edge once per (layer, edge_tile) -> edge_feat [L, E_pad, Fn] in cdt.
    const_lj = lambda l, j: (l, 0, 0)
    edge_feat = pl.pallas_call(
        functools.partial(_f_edge_kernel, compute_dtype=cdt),
        out_shape=jax.ShapeDtypeStruct((L, E_pad, Fn), cdt),
        grid_spec=pltpu.PrefetchScalarGridSpec(
            num_scalar_prefetch=0,
            grid=(L, E_pad // te),
            in_specs=[
                pl.BlockSpec((1, te, 1), lambda l, j: (l, j, 0)),   # edge weights (column)
                pl.BlockSpec((1, 1, Fe), const_lj),                 # w1
                pl.BlockSpec((1, 1, Fe), const_lj),                 # b1
                pl.BlockSpec((1, Fe, Fn), const_lj),                # w2
                pl.BlockSpec((1, 1, Fn), const_lj),                 # b2
            ],
            out_specs=pl.BlockSpec((1, te, Fn), lambda l, j: (l, j, 0)),
        ),
        compiler_params=pltpu.CompilerParams(
            dimension_semantics=("parallel", "parallel"),
            vmem_limit_bytes=32 * 1024 * 1024,
        ),
    )(ew_all, w1, b1, w2, b2)

    # ---- Pass 2: tiled scatter_add + f_node.
    const_lij = lambda l, i, j: (l, 0, 0)   # per-layer weights: re-fetched only when l changes
    out = pl.pallas_call(
        functools.partial(_scatter_fnode_kernel, compute_dtype=cdt),
        out_shape=jax.ShapeDtypeStruct((L, N_pad, Fn), jnp.float32),
        grid_spec=pltpu.PrefetchScalarGridSpec(
            num_scalar_prefetch=0,
            grid=(L, N_pad // tn, E_pad // te),
            in_specs=[
                pl.BlockSpec((1, 1, te), lambda l, i, j: (l, 0, j)),    # dst indices (lane-dense)
                pl.BlockSpec((1, te, Fn), lambda l, i, j: (l, j, 0)),   # precomputed edge_feat
                pl.BlockSpec((1, Fn, Fn), const_lij),                   # w3
                pl.BlockSpec((1, 1, Fn), const_lij),                    # b3
                pl.BlockSpec((1, Fn, Fn), const_lij),                   # w4
                pl.BlockSpec((1, 1, Fn), const_lij),                    # b4
            ],
            out_specs=pl.BlockSpec((1, tn, Fn), lambda l, i, j: (l, i, 0)),
            scratch_shapes=[pltpu.VMEM((tn, Fn), jnp.float32)],         # node_feat accumulator
        ),
        compiler_params=pltpu.CompilerParams(
            dimension_semantics=("parallel", "parallel", "arbitrary"),
            vmem_limit_bytes=32 * 1024 * 1024,
        ),
    )(dst_all, edge_feat, w3, b3, w4, b4)

    for a, l in enumerate(active):
        num_nodes = int(graphs[l][2])
        results[l] = out[a, :num_nodes, :node_dim]
    return results


# ---------------------------------------------------------------------------
# Parameter construction (deterministic, PyTorch nn.Linear-style init).
# ---------------------------------------------------------------------------
def _linear_params(key, in_f, out_f):
    kw, kb = jax.random.split(key)
    bound = 1.0 / math.sqrt(in_f)
    # Stored already transposed for x @ W; bias as [1, out_f] for lane broadcast.
    w = jax.random.uniform(kw, (in_f, out_f), jnp.float32, -bound, bound)
    b = jax.random.uniform(kb, (1, out_f), jnp.float32, -bound, bound)
    return w, b


def init_mlstruct_params(key, edge_dim, node_dim, phi_dim, n_layers):
    params = []
    for l in range(n_layers):
        k = jax.random.fold_in(key, l)
        k1, k2, k3, k4 = jax.random.split(k, 4)
        w1, b1 = _linear_params(k1, 1, edge_dim)          # f_edge Linear(1, edge_dim)
        w2, b2 = _linear_params(k2, edge_dim, node_dim)   # f_edge Linear(edge_dim, node_dim)
        w3, b3 = _linear_params(k3, node_dim, node_dim)   # f_node Linear(node_dim, node_dim)
        w4, b4 = _linear_params(k4, node_dim, node_dim)   # f_node Linear(node_dim, node_dim)
        # TODO(synk): g_phi (Linear(1,phi_dim)->ReLU->Linear(phi_dim,node_dim)) is initialized
        # by the PyTorch module but never used in forward; omitted here.
        params.append(dict(w1=w1, b1=b1, w2=w2, b2=b2, w3=w3, b3=b3, w4=w4, b4=b4))
    return params


# ---------------------------------------------------------------------------
# Pure-JAX reference for verification.
# ---------------------------------------------------------------------------
def _reference_forward(params, graphs, edge_w=False):
    outs = []
    for l_id, (edge_index, edge_weight, num_nodes) in enumerate(graphs):
        if edge_index.shape[1] == 0:
            outs.append(None)
            continue
        p = params[l_id]
        ew = (edge_weight if edge_w else jnp.ones_like(edge_weight)).reshape(-1, 1)
        h = jnp.maximum(ew @ p["w1"] + p["b1"], 0.0)
        edge_feat = h @ p["w2"] + p["b2"]
        node_feat = jnp.zeros((num_nodes, edge_feat.shape[1]),
                              jnp.float32).at[edge_index[1]].add(edge_feat)
        g = jnp.maximum(node_feat @ p["w3"] + p["b3"], 0.0)
        outs.append(g @ p["w4"] + p["b4"])
    return outs


if __name__ == "__main__":
    # Small, forward-consistent sizes.
    edge_dim, node_dim, phi_dim = 32, 32, 16
    n_layers = 3
    num_nodes = 16
    num_edges = 64

    root = jax.random.PRNGKey(0)
    params = init_mlstruct_params(jax.random.fold_in(root, 1),
                                  edge_dim, node_dim, phi_dim, n_layers)

    graphs = []
    for l in range(n_layers - 1):
        kg = jax.random.fold_in(jax.random.fold_in(root, 2), l)
        ksrc, kdst, kw = jax.random.split(kg, 3)
        edge_index = jnp.stack([
            jax.random.randint(ksrc, (num_edges,), 0, num_nodes, dtype=jnp.int32),
            jax.random.randint(kdst, (num_edges,), 0, num_nodes, dtype=jnp.int32),
        ])                                                        # [2, E]
        edge_weight = jax.random.uniform(kw, (num_edges,), jnp.float32)
        graphs.append((edge_index, edge_weight, num_nodes))
    # Last graph has no edges -> forward returns None for it (matches the PyTorch module).
    graphs.append((jnp.zeros((2, 0), jnp.int32), jnp.zeros((0,), jnp.float32), num_nodes))

    for edge_w in (False, True):
        refs = _reference_forward(params, graphs, edge_w=edge_w)

        # f32 compute path: everything in f32 -> tight agreement with the reference.
        outs = mlstruct_forward(params, graphs, edge_w=edge_w, compute_dtype=jnp.float32)
        outs = [jax.block_until_ready(o) if o is not None else None for o in outs]
        for o, r in zip(outs, refs):
            if r is None:
                assert o is None
                continue
            assert o.shape == (num_nodes, node_dim)
            assert jnp.allclose(o, r, atol=1e-4, rtol=1e-4), "f32 path mismatch vs reference"

        # bf16 fast path: bf16 MXU operands, f32 accumulation -> looser tolerance.
        outs = mlstruct_forward(params, graphs, edge_w=edge_w, compute_dtype=jnp.bfloat16)
        outs = [jax.block_until_ready(o) if o is not None else None for o in outs]
        for o, r in zip(outs, refs):
            if r is None:
                assert o is None
                continue
            assert o.shape == (num_nodes, node_dim)
            assert jnp.allclose(o, r, atol=1.5e-1, rtol=1.5e-1), "bf16 path mismatch vs reference"

    print("KERNEL_OK")
</pallas_src>

<mosaic_0001>
module attributes {stable_mosaic.version = 11 : i64} {
  func.func @_f_edge_kernel(%arg0: i32, %arg1: i32, %arg2: memref<1x128x1xf32, #tpu.memory_space<vmem>>, %arg3: memref<1x1x128xf32, #tpu.memory_space<vmem>>, %arg4: memref<1x1x128xf32, #tpu.memory_space<vmem>>, %arg5: memref<1x128x128xf32, #tpu.memory_space<vmem>>, %arg6: memref<1x1x128xf32, #tpu.memory_space<vmem>>, %arg7: memref<1x128x128xf32, #tpu.memory_space<vmem>>) attributes {dimension_semantics = [#tpu.dimension_semantics<parallel>, #tpu.dimension_semantics<parallel>], iteration_bounds = array<i64: 2, 1>, scalar_prefetch = 0 : i64, scratch_operands = 0 : i64, tpu.core_type = #tpu.core_type<tc>, window_params = [{transform_indices = @transform_0, window_bounds = array<i64: 1, 128, 1>}, {transform_indices = @transform_1, window_bounds = array<i64: 1, 1, 128>}, {transform_indices = @transform_2, window_bounds = array<i64: 1, 1, 128>}, {transform_indices = @transform_3, window_bounds = array<i64: 1, 128, 128>}, {transform_indices = @transform_4, window_bounds = array<i64: 1, 1, 128>}, {transform_indices = @transform_5, window_bounds = array<i64: 1, 128, 128>}]} {
    %c0 = arith.constant 0 : index
    %c0_0 = arith.constant 0 : index
    %c0_1 = arith.constant 0 : index
    %0 = vector.load %arg2[%c0, %c0_0, %c0_1] : memref<1x128x1xf32, #tpu.memory_space<vmem>>, vector<1x128x1xf32>
    %1 = vector.shape_cast %0 : vector<1x128x1xf32> to vector<128x1xf32>
    %c0_2 = arith.constant 0 : index
    %c0_3 = arith.constant 0 : index
    %c0_4 = arith.constant 0 : index
    %2 = vector.load %arg3[%c0_2, %c0_3, %c0_4] : memref<1x1x128xf32, #tpu.memory_space<vmem>>, vector<1x1x128xf32>
    %3 = vector.shape_cast %2 : vector<1x1x128xf32> to vector<1x128xf32>
    %4 = vector.broadcast %1 : vector<128x1xf32> to vector<128x128xf32>
    %5 = vector.broadcast %3 : vector<1x128xf32> to vector<128x128xf32>
    %6 = arith.mulf %4, %5 : vector<128x128xf32>
    %c0_5 = arith.constant 0 : index
    %c0_6 = arith.constant 0 : index
    %c0_7 = arith.constant 0 : index
    %7 = vector.load %arg4[%c0_5, %c0_6, %c0_7] : memref<1x1x128xf32, #tpu.memory_space<vmem>>, vector<1x1x128xf32>
    %8 = vector.shape_cast %7 : vector<1x1x128xf32> to vector<1x128xf32>
    %9 = vector.broadcast %8 : vector<1x128xf32> to vector<128x128xf32>
    %10 = arith.addf %6, %9 : vector<128x128xf32>
    %cst = arith.constant 0.000000e+00 : f32
    %11 = vector.broadcast %cst : f32 to vector<128x128xf32>
    %12 = arith.maximumf %10, %11 : vector<128x128xf32>
    %c0_8 = arith.constant 0 : index
    %c0_9 = arith.constant 0 : index
    %c0_10 = arith.constant 0 : index
    %13 = vector.load %arg5[%c0_8, %c0_9, %c0_10] : memref<1x128x128xf32, #tpu.memory_space<vmem>>, vector<1x128x128xf32>
    %14 = vector.shape_cast %13 : vector<1x128x128xf32> to vector<128x128xf32>
    %cst_11 = arith.constant dense<0.000000e+00> : vector<128x128xf32>
    %15 = tpu.matmul %12, %14, %cst_11 {dimension_numbers = #tpu.dot_dimension_numbers<[1], [0], [0], [1], [0, 0, 1, 1], [], []>} : vector<128x128xf32>, vector<128x128xf32>, vector<128x128xf32> -> vector<128x128xf32>
    %c0_12 = arith.constant 0 : index
    %c0_13 = arith.constant 0 : index
    %c0_14 = arith.constant 0 : index
    %16 = vector.load %arg6[%c0_12, %c0_13, %c0_14] : memref<1x1x128xf32, #tpu.memory_space<vmem>>, vector<1x1x128xf32>
    %17 = vector.shape_cast %16 : vector<1x1x128xf32> to vector<1x128xf32>
    %18 = vector.broadcast %17 : vector<1x128xf32> to vector<128x128xf32>
    %19 = arith.addf %15, %18 : vector<128x128xf32>
    %c0_15 = arith.constant 0 : index
    %c0_16 = arith.constant 0 : index
    %c0_17 = arith.constant 0 : index
    %20 = vector.load %arg7[%c0_15, %c0_16, %c0_17] : memref<1x128x128xf32, #tpu.memory_space<vmem>>, vector<1x128x128xf32>
    %21 = vector.shape_cast %20 : vector<1x128x128xf32> to vector<128x128xf32>
    %22 = vector.shape_cast %19 : vector<128x128xf32> to vector<1x128x128xf32>
    tpu.vector_store %arg7[%c0_15, %c0_16, %c0_17], %22 {strides = array<i32>} : memref<1x128x128xf32, #tpu.memory_space<vmem>>, vector<1x128x128xf32>,
    return
  }
  func.func @transform_0(%arg0: i32, %arg1: i32) -> (i32, i32, i32) {
    %c0_i32 = arith.constant 0 : i32
    %c0_i32_0 = arith.constant 0 : i32
    return %arg0, %arg1, %c0_i32 : i32, i32, i32
  }
  func.func @transform_1(%arg0: i32, %arg1: i32) -> (i32, i32, i32) {
    %c0_i32 = arith.constant 0 : i32
    %c0_i32_0 = arith.constant 0 : i32
    %c0_i32_1 = arith.constant 0 : i32
    return %arg0, %c0_i32, %c0_i32_0 : i32, i32, i32
  }
  func.func @transform_2(%arg0: i32, %arg1: i32) -> (i32, i32, i32) {
    %c0_i32 = arith.constant 0 : i32
    %c0_i32_0 = arith.constant 0 : i32
    %c0_i32_1 = arith.constant 0 : i32
    return %arg0, %c0_i32, %c0_i32_0 : i32, i32, i32
  }
  func.func @transform_3(%arg0: i32, %arg1: i32) -> (i32, i32, i32) {
    %c0_i32 = arith.constant 0 : i32
    %c0_i32_0 = arith.constant 0 : i32
    %c0_i32_1 = arith.constant 0 : i32
    return %arg0, %c0_i32, %c0_i32_0 : i32, i32, i32
  }
  func.func @transform_4(%arg0: i32, %arg1: i32) -> (i32, i32, i32) {
    %c0_i32 = arith.constant 0 : i32
    %c0_i32_0 = arith.constant 0 : i32
    %c0_i32_1 = arith.constant 0 : i32
    return %arg0, %c0_i32, %c0_i32_0 : i32, i32, i32
  }
  func.func @transform_5(%arg0: i32, %arg1: i32) -> (i32, i32, i32) {
    %c0_i32 = arith.constant 0 : i32
    %c0_i32_0 = arith.constant 0 : i32
    return %arg0, %arg1, %c0_i32 : i32, i32, i32
  }
}

</mosaic_0001>

<bundles_post_ra>
// kernel: tpu_custom_call.1
= control target key start
LH: loop header
LB: loop body
LE: loop exit
PB: predicated region body
PF: predicated region fallthrough
CT: control target
= control target key end

     0   :  { %10 = vsyncpa [#allocation3], 0  ;;  %s1332_s0 = inlined_call_operand.vmem [shape: f32[2,128,1], index: 0, kind: input, shape index: {}]   ;;  %s1333_s1 = inlined_call_operand.vmem [shape: f32[2,1,128], index: 1, kind: input, shape index: {}]   ;;  %s1334_s2 = inlined_call_operand.vmem [shape: f32[2,1,128], index: 2, kind: input, shape index: {}]   ;;  %s1335_s3 = inlined_call_operand.vmem [shape: f32[2,128,128], index: 3, kind: input, shape index: {}]   ;;  %s1336_s4 = inlined_call_operand.vmem [shape: f32[2,1,128], index: 4, kind: input, shape index: {}]   ;;  %s1337_s5 = inlined_call_operand.hbm [shape: f32[2,128,128], index: 5, kind: output, shape index: {}]  }
   0x1   :  { %12 = vsyncpa [#allocation3 + $0x1], 0  ;;  %s1105_s18 = smov 0   ;;  %s1107_s19 = smov 0  }
   0x2   :  { %s1109_s20 = smov 0   ;;  %s1111_s21 = smov 0  }
   0x3   :  { %s1113_s22 = smov 0   ;;  %s1115_s23 = smov 0  }
   0x4 LB: > { %s792_s24 = sadd.s32 4294967295, %s1069_s23   ;;  %s793_s25 = sadd.s32 4294967294, %s1069_s23   ;;  %s1069_s23 = sphi %s1115_s23, %s18_s23   ;;  %s1065_s22 = sphi %s1113_s22, %s1344_s22   ;;  %s1061_s21 = sphi %s1111_s21, %s1343_s21   ;;  %s1057_s20 = sphi %s1109_s20, %s1342_s20   ;;  %s1053_s19 = sphi %s1107_s19, %s1341_s19   ;;  %s1049_s18 = sphi %s1105_s18, %s1340_s18  }
   0x5   : > { %s30_s26 = sadd.s32 1, %s1065_s22  ;;  %s171_s27 = sadd.s32 1, %s1057_s20 }
   0x6   : > { %p32_p0 = scmp.ge.s32.totalorder %s30_s26, 2  ;;  %p181_p1 = scmp.ne.s32.totalorder %s1057_s20, %s1053_s19 }
   0x7   : > { %p182_p2 = scmp.eq.s32.totalorder %s792_s24, 1  ;;  %p187_p3 = scmp.ne.s32.totalorder %s1053_s19, %s1049_s18 }
   0x8   : > { %s1346_s26 = smov (%p32_p0, %s30_s26), 0  ;;  %p188_p5 = scmp.eq.s32.totalorder %s793_s25, 1 }
   0x9   : > { %p1145_p4 = por %p182_p2, %p181_p1  ;;  %s166_s29 = ssub.s32 %s1065_s22, %s1346_s26 }
   0xa   : > { %p796_p6 = scmp.ge.s32.totalorder %s1069_s23, 1  ;;  %p169_p7 = scmp.eq.s32.totalorder %s166_s29, 0 }
   0xb   : > { %p1152_p8 = por %p188_p5, %p187_p3  ;;  %p245_p9 = scmp.lt.s32.totalorder %s1069_s23, 3 }
   0xc   : > { %s1158_s6 = scalar_select %p169_p7, %s1057_s20, %s171_s27  }
   0xd   : > { %p246_p10 = pnand %p796_p6, %p245_p9 }
   0xe   : > { %p292_p11 = scmp.lt.s32.totalorder (!%p246_p10), %s1061_s21, 1  ;;  %s288_s29 = sand.u32 (!%p246_p10), 1, %s1053_s19  }
   0xf   : > { %249 = sbr.rel (%p246_p10) target bundleno = 394 (0x18a), region = 40  ;;  %s1072_s24 = smov (!%p246_p10), [#allocation2]  }
  0x10   : > { %s997_s25 = sshll.u32 (!%p246_p10), %s1072_s24, 4  ;;  %s998_s25 = int_to_ptr.vmem [resolvable:$false] %s997_s25 }
  0x14   : > { %v1071_v0 = vmov 0   ;;  %s1162_s7 = scalar_select %p292_p11, %s1061_s21, 1 }
  0x15   : > { %992 = vset.pattern.permute.xlu1 %v1071_v0  ;;  %991 = vset.pattern.permute.xlu0 %v1071_v0 }
  0x16   : > { %s810_s8 = sshll.u32 %s1162_s7, 7  ;;  %s303_s17 = scalar_lea.vmem %s1333_s1, %s1162_s7 }
  0x17   : > { %s1168_s11 = scalar_lea.vmem %s1332_s0, %s810_s8  ;;  %s1175_s14 = scalar_lea.vmem %s1335_s3, %s810_s8  ;;  %v1215_v33 = vld [vmem:[%s303_s17] ss:$0 sm:$0xff] }
  0x18   : > { %v317_v1 = vld [vmem:[%s1168_s11 + $0x8] sm:$0xff]  ;;  %v316_v2 = vld [vmem:[%s1168_s11] sm:$0xff]  ;;  %v489_v5 = vld [vmem:[%s1175_s14 + $0x78] sm:$0xff]  ;;  %s306_s27 = scalar_lea.vmem %s1334_s2, %s1162_s7  ;;  %s314_s10 = scalar_lea.vmem %s1336_s4, %s1162_s7 }
  0x19   : > { %340 = vperm.xlu1 %992, %v317_v1   ;;  %335 = vperm.xlu0 %991, %v316_v2   ;;  %v325_v3 = vld [vmem:[%s1168_s11 + $0x48] sm:$0xff]  ;;  %v324_v4 = vld [vmem:[%s1168_s11 + $0x40] sm:$0xff]  ;;  %v488_v6 = vld [vmem:[%s1175_s14 + $0x70] sm:$0xff]  ;;  %s812_s7 = sshll.u32 %s1061_s21, 11  ;;  %s1287_s21 = scalar_lea.sflag [#allocation3], %s288_s29 }
  0x1a   : > { %v326_v7 = vld [vmem:[%s1168_s11 + $0x50] sm:$0xff]  ;;  %845 = vmatprep.subr.mxu0 %v489_v5  ;;  %901 = vmatprep.subr.mxu1 %v489_v5  ;;  %v487_v9 = vld [vmem:[%s1175_s14 + $0x68] sm:$0xff]  ;;  %v327_v10 = vld [vmem:[%s1168_s11 + $0x58] sm:$0xff]  ;;  %s1277_s16 = scalar_lea.hbm %s1337_s5, %s812_s7 }
  0x1b   : > { %v318_v8 = vld [vmem:[%s1168_s11 + $0x10] sm:$0xff]  ;;  %846 = vmatpush3.msra.mxu0 %v489_v5  ;;  %917 = vmatpush3.msra.mxu1 %v489_v5  ;;  %v319_v11 = vld [vmem:[%s1168_s11 + $0x18] sm:$0xff]  ;;  %v486_v12 = vld [vmem:[%s1175_s14 + $0x60] sm:$0xff] }
  0x1c   : > { %847 = vmatprep.subr.mxu0 %v488_v6  ;;  %902 = vmatprep.subr.mxu1 %v488_v6  ;;  %v485_v13 = vld [vmem:[%s1175_s14 + $0x58] sm:$0xff]  ;;  %v328_v14 = vld [vmem:[%s1168_s11 + $0x60] sm:$0xff]  ;;  %v484_v16 = vld [vmem:[%s1175_s14 + $0x50] sm:$0xff] }
  0x1d   : > { %380 = vperm.xlu1 %992, %v325_v3   ;;  %375 = vperm.xlu0 %991, %v324_v4   ;;  %v320_v15 = vld [vmem:[%s1168_s11 + $0x20] sm:$0xff]  ;;  %v329_v17 = vld [vmem:[%s1168_s11 + $0x68] sm:$0xff]  ;;  %v330_v21 = vld [vmem:[%s1168_s11 + $0x70] sm:$0xff] }
  0x1e   : > { %848 = vmatpush3.msra.mxu0 %v488_v6  ;;  %918 = vmatpush3.msra.mxu1 %v488_v6  ;;  %v321_v18 = vld [vmem:[%s1168_s11 + $0x28] sm:$0xff]  ;;  %v482_v20 = vld [vmem:[%s1175_s14 + $0x40] sm:$0xff]  ;;  %v322_v22 = vld [vmem:[%s1168_s11 + $0x30] sm:$0xff] }
  0x1f   : > { %849 = vmatprep.subr.mxu0 %v487_v9  ;;  %903 = vmatprep.subr.mxu1 %v487_v9  ;;  %v483_v19 = vld [vmem:[%s1175_s14 + $0x48] sm:$0xff]  ;;  %v481_v23 = vld [vmem:[%s1175_s14 + $0x38] sm:$0xff]  ;;  %v480_v26 = vld [vmem:[%s1175_s14 + $0x30] sm:$0xff] }
  0x20   : > { %850 = vmatpush3.msra.mxu0 %v487_v9  ;;  %919 = vmatpush3.msra.mxu1 %v487_v9  ;;  %v331_v24 = vld [vmem:[%s1168_s11 + $0x78] sm:$0xff]  ;;  %v479_v27 = vld [vmem:[%s1175_s14 + $0x28] sm:$0xff]  ;;  %v478_v28 = vld [vmem:[%s1175_s14 + $0x20] sm:$0xff] }
  0x21   : > { %385 = vperm.xlu1 %992, %v326_v7   ;;  %345 = vperm.xlu0 %991, %v318_v8   ;;  %v323_v25 = vld [vmem:[%s1168_s11 + $0x38] sm:$0xff]  ;;  %v476_v30 = vld [vmem:[%s1175_s14 + $0x10] sm:$0xff]  ;;  %v475_v31 = vld [vmem:[%s1175_s14 + $0x8] sm:$0xff]  ;;  %s797_s11 = sshll.u32 %s288_s29, 7 }
  0x22   : > { %851 = vmatprep.subr.mxu0 %v486_v12  ;;  %904 = vmatprep.subr.mxu1 %v486_v12  ;;  %v477_v29 = vld [vmem:[%s1175_s14 + $0x18] sm:$0xff]  ;;  %v474_v32 = vld [vmem:[%s1175_s14] sm:$0xff]  ;;  %s1258_s12 = scalar_lea.vmem [#allocation2], %s797_s11 }
  0x23   : > { %852 = vmatpush3.msra.mxu0 %v486_v12  ;;  %920 = vmatpush3.msra.mxu1 %v486_v12  ;;  %v1217_v34 = vld [vmem:[%s306_s27] ss:$0 sm:$0xff]  ;;  %s674_s13 = sshll.u32 %s1258_s12, 4  ;;  %s999_s27 = scalar_lea.vmem %s998_s25, 4096  ;;  %s1279_s13 = int_to_ptr.vmem [resolvable:$true] %s674_s13 }
  0x24   : > { %853 = vmatprep.subr.mxu0 %v485_v13  ;;  %905 = vmatprep.subr.mxu1 %v485_v13  ;;  %s993_s17 = scalar_lea.vmem %s1279_s13, 2048  ;;  %p1000_p1 = scmp.lt.s32.totalorder %s1279_s13, %s998_s25 }
  0x25   : > { %390 = vperm.xlu1 %992, %v327_v10   ;;  %350 = vperm.xlu0 %991, %v319_v11   ;;  %p994_p12 = scmp.ne.s32.totalorder %s1279_s13, %s993_s17  ;;  %p1001_p2 = scmp.lt.s32.totalorder %s999_s27, %s993_s17 }
  0x26   : > { %854 = vmatpush3.msra.mxu0 %v485_v13  ;;  %921 = vmatpush3.msra.mxu1 %v485_v13 }
  0x27   : > { %855 = vmatprep.subr.mxu0 %v484_v16  ;;  %906 = vmatprep.subr.mxu1 %v484_v16  ;;  %p995_p13 = pnand %p994_p12, %p1145_p4  ;;  %p1002_p3 = por %p1001_p2, %p1000_p1 }
  0x28   : > { %856 = vmatpush3.msra.mxu0 %v484_v16  ;;  %922 = vmatpush3.msra.mxu1 %v484_v16 }
  0x29   : > { %395 = vperm.xlu1 %992, %v328_v14   ;;  %355 = vperm.xlu0 %991, %v320_v15   ;;  %p996_p0 = pneg %p995_p13 }
  0x2a   : > { %857 = vmatprep.subr.mxu0 %v483_v19  ;;  %907 = vmatprep.subr.mxu1 %v483_v19 }
  0x2b   : > { %858 = vmatpush3.msra.mxu0 %v483_v19  ;;  %923 = vmatpush3.msra.mxu1 %v483_v19  ;;  %p1003_p5 = pnand %p1002_p3, %p996_p0 }
  0x2c   : > { %859 = vmatprep.subr.mxu0 %v482_v20  ;;  %908 = vmatprep.subr.mxu1 %v482_v20 }
  0x2d   : > { %400 = vperm.xlu1 %992, %v329_v17   ;;  %360 = vperm.xlu0 %991, %v321_v18  }
  0x2e   : > { %860 = vmatpush3.msra.mxu0 %v482_v20  ;;  %924 = vmatpush3.msra.mxu1 %v482_v20 }
  0x2f   : > { %861 = vmatprep.subr.mxu0 %v481_v23  ;;  %909 = vmatprep.subr.mxu1 %v481_v23 }
  0x30   : > { %862 = vmatpush3.msra.mxu0 %v481_v23  ;;  %925 = vmatpush3.msra.mxu1 %v481_v23 }
  0x31   : > { %405 = vperm.xlu1 %992, %v330_v21   ;;  %365 = vperm.xlu0 %991, %v322_v22  }
  0x32   : > { %863 = vmatprep.subr.mxu0 %v480_v26  ;;  %910 = vmatprep.subr.mxu1 %v480_v26 }
  0x33   : > { %864 = vmatpush3.msra.mxu0 %v480_v26  ;;  %926 = vmatpush3.msra.mxu1 %v480_v26 }
  0x34   : > { %865 = vmatprep.subr.mxu0 %v479_v27  ;;  %911 = vmatprep.subr.mxu1 %v479_v27 }
  0x35   : > { %410 = vperm.xlu1 %992, %v331_v24   ;;  %370 = vperm.xlu0 %991, %v323_v25  }
  0x36   : > { %866 = vmatpush3.msra.mxu0 %v479_v27  ;;  %927 = vmatpush3.msra.mxu1 %v479_v27 }
  0x37   : > { %867 = vmatprep.subr.mxu0 %v478_v28  ;;  %912 = vmatprep.subr.mxu1 %v478_v28 }
  0x38   : > { %868 = vmatpush3.msra.mxu0 %v478_v28  ;;  %928 = vmatpush3.msra.mxu1 %v478_v28 }
  0x39   : > { %869 = vmatprep.subr.mxu0 %v477_v29  ;;  %913 = vmatprep.subr.mxu1 %v477_v29 }
  0x3a   : > { %870 = vmatpush3.msra.mxu0 %v477_v29  ;;  %929 = vmatpush3.msra.mxu1 %v477_v29 }
  0x3b   : > { %871 = vmatprep.subr.mxu0 %v476_v30  ;;  %914 = vmatprep.subr.mxu1 %v476_v30 }
  0x3c   : > { %872 = vmatpush3.msra.mxu0 %v476_v30  ;;  %930 = vmatpush3.msra.mxu1 %v476_v30 }
  0x3d   : > { %873 = vmatprep.subr.mxu0 %v475_v31  ;;  %915 = vmatprep.subr.mxu1 %v475_v31 }
  0x3e   : > { %874 = vmatpush3.msra.mxu0 %v475_v31  ;;  %931 = vmatpush3.msra.mxu1 %v475_v31 }
  0x3f   : > { %875 = vmatprep.subr.mxu0 %v474_v32  ;;  %916 = vmatprep.subr.mxu1 %v474_v32 }
  0x40   : > { %876 = vmatpush3.msra.mxu0 %v474_v32  ;;  %932 = vmatpush3.msra.mxu1 %v474_v32 }
  0x94   : > { %v341_v35 = vpop.permute.xlu1 %340  ;;  %v336_v36 = vpop.permute.xlu0 %335 }
  0x95   : > { %v420_v37 = vmul.f32 %v1215_v33, %v341_v35  ;;  %v419_v38 = vmul.f32 %v1215_v33, %v336_v36 }
  0x97   : > { %v443_v39 = vadd.f32 %v1217_v34, %v420_v37  ;;  %v442_v40 = vadd.f32 %v1217_v34, %v419_v38  ;;  %v804_v37 = vld [vmem:[%s314_s10] ss:$0 sm:$0xff] }
  0x98   : > { %v381_v41 = vpop.permute.xlu1 %380  ;;  %v376_v42 = vpop.permute.xlu0 %375 }
  0x99   : > { %v459_v43 = vmax.f32 %v443_v39, 0.0  ;;  %v428_v44 = vmul.f32 %v1215_v33, %v381_v41  ;;  %v427_v45 = vmul.f32 %v1215_v33, %v376_v42  ;;  %v458_v46 = vmax.f32 %v442_v40, 0.0 }
  0x9b   : > { %v451_v47 = vadd.f32 %v1217_v34, %v428_v44  ;;  %877 = vmatprep.mubr.f32.mxu0 %v458_v46  ;;  %v450_v48 = vadd.f32 %v1217_v34, %v427_v45 }
  0x9c   : > { %v386_v49 = vpop.permute.xlu1 %385  ;;  %878 = vmatmul.mubr.f32.vlgmr.msra.gmra.mxu0 %v459_v43  ;;  %v346_v50 = vpop.permute.xlu0 %345 }
  0x9d   : > { %v467_v51 = vmax.f32 %v451_v47, 0.0  ;;  %v429_v52 = vmul.f32 %v1215_v33, %v386_v49  ;;  %v421_v53 = vmul.f32 %v1215_v33, %v346_v50  ;;  %v466_v54 = vmax.f32 %v450_v48, 0.0 }
  0x9f   : > { %v452_v55 = vadd.f32 %v1217_v34, %v429_v52  ;;  %v444_v56 = vadd.f32 %v1217_v34, %v421_v53  ;;  %889 = vmatprep.mubr.f32.mxu1 %v466_v54 }
  0xa0   : > { %v391_v57 = vpop.permute.xlu1 %390  ;;  %890 = vmatmul.mubr.f32.vlgmr.msra.gmra.mxu1 %v467_v51  ;;  %v351_v58 = vpop.permute.xlu0 %350 }
  0xa1   : > { %v468_v59 = vmax.f32 %v452_v55, 0.0  ;;  %v460_v60 = vmax.f32 %v444_v56, 0.0  ;;  %v430_v61 = vmul.f32 %v1215_v33, %v391_v57  ;;  %v422_v62 = vmul.f32 %v1215_v33, %v351_v58 }
  0xa3   : > { %v453_v63 = vadd.f32 %v1217_v34, %v430_v61  ;;  %v445_v0 = vadd.f32 %v1217_v34, %v422_v62  ;;  %880 = vmatprep.mubr.f32.mxu0 %v460_v60  ;;  %892 = vmatprep.mubr.f32.mxu1 %v468_v59 }
  0xa4   : > { %v396_v1 = vpop.permute.xlu1 %395  ;;  %v356_v2 = vpop.permute.xlu0 %355 }
  0xa5   : > { %v469_v3 = vmax.f32 %v453_v63, 0.0  ;;  %v461_v4 = vmax.f32 %v445_v0, 0.0  ;;  %v431_v5 = vmul.f32 %v1215_v33, %v396_v1  ;;  %v423_v6 = vmul.f32 %v1215_v33, %v356_v2 }
  0xa7   : > { %v454_v7 = vadd.f32 %v1217_v34, %v431_v5  ;;  %v446_v8 = vadd.f32 %v1217_v34, %v423_v6  ;;  %881 = vmatmul.mubr.f32.gmra.mxu0 %v461_v4  ;;  %893 = vmatmul.mubr.f32.gmra.mxu1 %v469_v3 }
  0xa8   : > { %v401_v9 = vpop.permute.xlu1 %400  ;;  %v361_v10 = vpop.permute.xlu0 %360 }
  0xa9   : > { %v470_v11 = vmax.f32 %v454_v7, 0.0  ;;  %v462_v12 = vmax.f32 %v446_v8, 0.0  ;;  %v432_v13 = vmul.f32 %v1215_v33, %v401_v9  ;;  %v424_v14 = vmul.f32 %v1215_v33, %v361_v10 }
  0xab   : > { %v455_v15 = vadd.f32 %v1217_v34, %v432_v13  ;;  %v447_v16 = vadd.f32 %v1217_v34, %v424_v14  ;;  %883 = vmatprep.mubr.f32.mxu0 %v462_v12  ;;  %895 = vmatprep.mubr.f32.mxu1 %v470_v11 }
  0xac   : > { %v406_v17 = vpop.permute.xlu1 %405  ;;  %v366_v18 = vpop.permute.xlu0 %365 }
  0xad   : > { %v471_v19 = vmax.f32 %v455_v15, 0.0  ;;  %v463_v20 = vmax.f32 %v447_v16, 0.0  ;;  %v433_v21 = vmul.f32 %v1215_v33, %v406_v17  ;;  %v425_v22 = vmul.f32 %v1215_v33, %v366_v18 }
  0xaf   : > { %v456_v23 = vadd.f32 %v1217_v34, %v433_v21  ;;  %v448_v24 = vadd.f32 %v1217_v34, %v425_v22  ;;  %884 = vmatmul.mubr.f32.gmra.mxu0 %v463_v20  ;;  %896 = vmatmul.mubr.f32.gmra.mxu1 %v471_v19 }
  0xb0   : > { %v411_v25 = vpop.permute.xlu1 %410  ;;  %v371_v26 = vpop.permute.xlu0 %370 }
  0xb1   : > { %v472_v27 = vmax.f32 %v456_v23, 0.0  ;;  %v464_v28 = vmax.f32 %v448_v24, 0.0  ;;  %v434_v29 = vmul.f32 %v1215_v33, %v411_v25  ;;  %v426_v30 = vmul.f32 %v1215_v33, %v371_v26 }
  0xb3   : > { %v457_v31 = vadd.f32 %v1217_v34, %v434_v29  ;;  %v449_v32 = vadd.f32 %v1217_v34, %v426_v30  ;;  %886 = vmatprep.mubr.f32.mxu0 %v464_v28  ;;  %898 = vmatprep.mubr.f32.mxu1 %v472_v27 }
  0xb5   : > { %v473_v35 = vmax.f32 %v457_v31, 0.0  ;;  %v465_v36 = vmax.f32 %v449_v32, 0.0 }
  0xb7   : > { %887 = vmatmul.mubr.f32.gmra.mxu0 %v465_v36  ;;  %899 = vmatmul.mubr.f32.gmra.mxu1 %v473_v35 }
 0x15c   : > { %v879_v38 = vpop.f32.mrf.mxu0 }
 0x15d   : > { %v569_v33 = vadd.f32 %v879_v38, %v804_v37 }
 0x15e   : > { %v563_v39 = vpop.f32.mrf.mxu0 }
 0x15f   : > { %643 = vst [vmem:[%s1258_s12 + $0x8] sm:$0xff] %v569_v33  ;;  %v564_v34 = vadd.f32 %v804_v37, %v563_v39 }
 0x160   : > { %v891_v40 = vpop.f32.mrf.mxu1 }
 0x161   : > { %642 = vst [vmem:[%s1258_s12] sm:$0xff] %v564_v34  ;;  %v609_v41 = vadd.f32 %v891_v40, %v804_v37 }
 0x162   : > { %v603_v42 = vpop.f32.mrf.mxu1 }
 0x163   : > { %651 = vst [vmem:[%s1258_s12 + $0x48] sm:$0xff] %v609_v41  ;;  %v604_v43 = vadd.f32 %v804_v37, %v603_v42 }
 0x165   : > { %650 = vst [vmem:[%s1258_s12 + $0x40] sm:$0xff] %v604_v43 }
 0x167   : > { %v882_v44 = vpop.f32.mrf.mxu0  ;;  %v894_v45 = vpop.f32.mrf.mxu1 }
 0x168   : > { %v579_v46 = vadd.f32 %v882_v44, %v804_v37  ;;  %v619_v47 = vadd.f32 %v894_v45, %v804_v37 }
 0x169   : > { %v573_v48 = vpop.f32.mrf.mxu0  ;;  %v613_v49 = vpop.f32.mrf.mxu1 }
 0x16a   : > { %645 = vst [vmem:[%s1258_s12 + $0x18] sm:$0xff] %v579_v46  ;;  %653 = vst [vmem:[%s1258_s12 + $0x58] sm:$0xff] %v619_v47  ;;  %v574_v50 = vadd.f32 %v804_v37, %v573_v48  ;;  %v614_v51 = vadd.f32 %v804_v37, %v613_v49 }
 0x16c   : > { %644 = vst [vmem:[%s1258_s12 + $0x10] sm:$0xff] %v574_v50  ;;  %652 = vst [vmem:[%s1258_s12 + $0x50] sm:$0xff] %v614_v51 }
 0x16f   : > { %v885_v52 = vpop.f32.mrf.mxu0  ;;  %v897_v53 = vpop.f32.mrf.mxu1 }
 0x170   : > { %v589_v54 = vadd.f32 %v885_v52, %v804_v37  ;;  %v629_v55 = vadd.f32 %v897_v53, %v804_v37 }
 0x171   : > { %v583_v56 = vpop.f32.mrf.mxu0  ;;  %v623_v57 = vpop.f32.mrf.mxu1 }
 0x172   : > { %647 = vst [vmem:[%s1258_s12 + $0x28] sm:$0xff] %v589_v54  ;;  %655 = vst [vmem:[%s1258_s12 + $0x68] sm:$0xff] %v629_v55  ;;  %v584_v58 = vadd.f32 %v804_v37, %v583_v56  ;;  %v624_v59 = vadd.f32 %v804_v37, %v623_v57 }
 0x174   : > { %646 = vst [vmem:[%s1258_s12 + $0x20] sm:$0xff] %v584_v58  ;;  %654 = vst [vmem:[%s1258_s12 + $0x60] sm:$0xff] %v624_v59 }
 0x177   : > { %v888_v60 = vpop.f32.mrf.mxu0  ;;  %v900_v61 = vpop.f32.mrf.mxu1 }
 0x178   : > { %v599_v62 = vadd.f32 %v888_v60, %v804_v37  ;;  %v639_v63 = vadd.f32 %v900_v61, %v804_v37 }
 0x179   : > { %v593_v0 = vpop.f32.mrf.mxu0  ;;  %v633_v1 = vpop.f32.mrf.mxu1 }
 0x17a   : > { %649 = vst [vmem:[%s1258_s12 + $0x38] sm:$0xff] %v599_v62  ;;  %657 = vst [vmem:[%s1258_s12 + $0x78] sm:$0xff] %v639_v63  ;;  %v594_v2 = vadd.f32 %v804_v37, %v593_v0  ;;  %v634_v3 = vadd.f32 %v804_v37, %v633_v1 }
 0x17c   : > { %648 = vst [vmem:[%s1258_s12 + $0x30] sm:$0xff] %v594_v2  ;;  %656 = vst [vmem:[%s1258_s12 + $0x70] sm:$0xff] %v634_v3 }
 0x17d   : > { %1006 = shalt.err (!%p1003_p5)
}
 0x17e   : > { %s1007_s29 = scalar_lea.hbm %s1277_s16, 2048  ;;  %s1011_s10 = scalar_lea.hbm %s1337_s5, 4096 }
 0x17f   : > { %p1008_p6 = scmp.ne.s32.totalorder %s1277_s16, %s1007_s29  ;;  %p1012_p10 = scmp.lt.s32.totalorder %s1277_s16, %s1337_s5 }
 0x180   : > { %p1013_p11 = scmp.lt.s32.totalorder %s1011_s10, %s1007_s29 }
 0x181   : > { %p1009_p7 = pnand %p1008_p6, %p1145_p4 }
 0x182   : > { %p1014_p12 = por %p1013_p11, %p1012_p10 }
 0x183   : > { %p1010_p9 = pneg %p1009_p7 }
 0x185   : > { %p1015_p13 = pnand %p1014_p12, %p1010_p9 }
 0x187   : > { %1018 = shalt.err (!%p1015_p13)
}
 0x188   : > { %s1073_s7 = smov 128   ;;  %s1074_s14 = smov 8  }
 0x189   : > { %933 = dma.vmem_to_hbm [thread:$0]  (%p1145_p4), %s1279_s13, 2048, %s1277_s16, %s1287_s21, %s1073_s7, %s1073_s7, %s1074_s14  }
 0x18a PF: > { %p939_p0 = scmp.ge.s32.totalorder %s1069_s23, 2  ;;  %s689_s15 = sand.u32 1, %s1049_s18  }
 0x18b   : > { %s690_s17 = scalar_lea.sflag [#allocation3], %s689_s15 }
 0x18c   : > { %p936_p1 = pnand %p939_p0, %p1152_p8 }
 0x18e   : > { %p937_p2 = pneg %p936_p1 }
 0x190   : > { %1044 = dma.done.wait (%p937_p2), %s690_s17, 2048  }
 0x191   : > { %1046 = vsyncadd (%p937_p2), %s690_s17, 4294965248  ;;  %s18_s23 = sadd.s32 1, %s1069_s23   ;;  %s1340_s18 = smov %s1053_s19 }
 0x192   : > { %p15_p3 = scmp.ge.s32.totalorder %s18_s23, 4   ;;  %s1341_s19 = smov %s1057_s20 }
 0x193   : > { %s1342_s20 = smov %s1158_s6  ;;  %s1343_s21 = smov %s1065_s22 }
 0x194   : > { %s1344_s22 = smov %s1346_s26  ;;  %17 = sbr.rel (!%p15_p3) target bundleno = 4 (0x4), region = 87 }
 0x199   :  { %695 = vsyncpa [#allocation3], 1 }
 0x19a   :  { %697 = vsyncpa [#allocation3 + $0x1], 1 }

</bundles_post_ra>
